<compile_context>
chip_gen: v7x
topology: tpu7x:2x2x1
jax: 0.10.0
libtpu: 0.0.40
codegen_flags: <defaults>
</compile_context>

<pallas_src>
import functools

import jax
import jax.numpy as jnp
from jax.experimental import pallas as pl
from jax.experimental.pallas import tpu as pltpu

_LANE = 128
_SUBLANE = 8


def _round_up(x, m):
    return (x + m - 1) // m * m


def _single_buffer_supported():
    """Feature check: does this jax support pipeline_mode=pl.Buffered(1)?"""
    if not hasattr(pl, "Buffered"):
        return False
    try:
        pl.BlockSpec((_SUBLANE, _LANE), lambda i: (0, 0),
                     pipeline_mode=pl.Buffered(1))
    except TypeError:
        return False
    return True


def _choose_batch_tile(batch, batch_tile):
    """128-aligned batch tiles; single grid step for small batches.

    Only split the batch when every grid step gets >= 128 real rows (MXU row
    fill); otherwise run one step whose block equals the (16-aligned) padded
    batch, which is exempt from the 128-row divisibility rule.
    """
    tile_cap = max(_LANE, _round_up(batch_tile, _LANE))
    if batch <= tile_cap:
        tile = _round_up(batch, 2 * _SUBLANE)  # 16: clean bf16 sublane packing
        return tile, tile
    tile = tile_cap
    return tile, _round_up(batch, tile)


def _mlp_kernel(x_ref, *refs, n_layers, matmul_dtype):
    """refs = (W1, b1, W2, b2, ..., W_out, b_out, out_ref) for one batch tile.

    y = tanh(...tanh(x @ W1 + b1)...) @ W_out + b_out.
    Matmuls run on the MXU in `matmul_dtype` with f32 accumulation. The tanh
    runs in `matmul_dtype`: bf16 EUP on v6e/v7x (2x transcendental throughput,
    the binding unit for typical policy hidden sizes); on v5e Mosaic upcasts.
    """
    out_ref = refs[-1]
    p = refs[:-1]

    h = x_ref[...]                                     # (tile, ob_dim)
    for layer in range(n_layers):
        w = p[2 * layer][...]                          # (K, Hpad) matmul_dtype
        b = p[2 * layer + 1][...]                      # (1, Hpad) f32
        y = jnp.dot(h, w, preferred_element_type=jnp.float32) + b
        h = jnp.tanh(y.astype(matmul_dtype))
    w_out = p[2 * n_layers][...]
    b_out = p[2 * n_layers + 1][...]
    y = jnp.dot(h, w_out, preferred_element_type=jnp.float32) + b_out
    out_ref[...] = y.astype(out_ref.dtype)


class PallasMLPPolicy:
    """Pallas-TPU forward pass of MLPPolicy (mean_net / logits_na MLP).

    Parameters are zero-padded and cast to the MXU dtype ONCE at construction
    and kept resident in VMEM across the batch grid. Padding is numerically
    inert: padded hidden units get zero incoming weights + zero bias
    (tanh(0)=0) and zero outgoing rows; padded output lanes are sliced off.

    params: [(W1, b1), ..., (W_out, b_out)] with W as (in, out), b as (1, out)
            (equivalent to PyTorch's x @ W.T + b).
    batch_tile: rows per grid step cap. 256 is sized for v7x's 64 MiB VMEM;
            pass 512 on v5e/v6e (128 MiB VMEM, no megacore trade-off) for
            large batches.
    """

    def __init__(self, params, *, matmul_dtype=jnp.bfloat16, batch_tile=256):
        self.n_layers = len(params) - 1
        self.ob_dim = int(params[0][0].shape[0])
        self.ac_dim = int(params[-1][0].shape[1])
        hidden = int(params[0][0].shape[1]) if self.n_layers > 0 else self.ac_dim
        self.h_pad = _round_up(hidden, _LANE)
        self.n_out = _round_up(self.ac_dim, _LANE)
        self.matmul_dtype = jnp.dtype(matmul_dtype)
        self.batch_tile = batch_tile
        self.single_buffer = _single_buffer_supported()

        # ---- pad + cast parameters once (hoisted out of the per-call path) --
        flat = []
        for li, (w, b) in enumerate(params):
            k, n = w.shape
            kp = k if li == 0 else _round_up(k, _LANE)  # natural K for layer 0
            npad = _round_up(n, _LANE)
            w_p = jnp.zeros((kp, npad), jnp.float32).at[:k, :n].set(w)
            b_p = jnp.zeros((1, npad), jnp.float32).at[:, :n].set(b)
            flat.append(w_p.astype(self.matmul_dtype))  # weights -> MXU dtype
            flat.append(b_p)                            # biases stay f32
        self.flat_params = tuple(flat)
        self.param_shapes = tuple(p.shape for p in self.flat_params)
        self.weight_bytes = int(sum(p.size * p.dtype.itemsize
                                    for p in self.flat_params))
        self._call_cache = {}

    def _build_call(self, tile, padded_b):
        key = (tile, padded_b)
        if key in self._call_cache:
            return self._call_cache[key]

        itemsize = self.matmul_dtype.itemsize
        in_tile_bytes = tile * self.ob_dim * itemsize
        out_tile_bytes = tile * self.n_out * 4
        act_bytes = 3 * tile * max(self.h_pad, self.n_out) * 4
        buf_count = 1 if self.single_buffer else 2
        resident = (buf_count * self.weight_bytes
                    + 2 * (in_tile_bytes + out_tile_bytes))
        if resident > (48 << 20):
            # TODO(synk): tile the hidden dim with a K-reduction grid axis and
            # an f32 accumulator scratch instead of keeping weights resident.
            raise ValueError(
                f"resident VMEM footprint {resident / 2**20:.1f} MiB exceeds "
                "the 48 MiB budget reserved for v7x (64 MiB physical VMEM)")
        footprint = resident + act_bytes
        vmem_limit = int(min(max(2 * footprint, 32 << 20), 56 << 20))

        # obs stream: natural ob_dim as the (full-array) last block dim.
        in_specs = [pl.BlockSpec((tile, self.ob_dim), lambda i: (i, 0))]
        for shape in self.param_shapes:
            if self.single_buffer:
                # Grid-invariant params: single resident VMEM buffer.
                spec = pl.BlockSpec(shape, lambda i: (0, 0),
                                    pipeline_mode=pl.Buffered(1))
            else:
                spec = pl.BlockSpec(shape, lambda i: (0, 0))
            in_specs.append(spec)
        out_spec = pl.BlockSpec((tile, self.n_out), lambda i: (i, 0))

        flops = 2 * padded_b * (self.ob_dim * self.h_pad
                                + max(self.n_layers - 1, 0) * self.h_pad * self.h_pad
                                + self.h_pad * self.n_out)
        transcendentals = padded_b * self.n_layers * self.h_pad
        bytes_accessed = (padded_b * self.ob_dim * itemsize
                          + self.weight_bytes
                          + padded_b * self.n_out * 4)
        cost = pl.CostEstimate(flops=int(flops),
                               transcendentals=int(transcendentals),
                               bytes_accessed=int(bytes_accessed))

        kernel = functools.partial(_mlp_kernel, n_layers=self.n_layers,
                                   matmul_dtype=self.matmul_dtype)
        call = pl.pallas_call(
            kernel,
            out_shape=jax.ShapeDtypeStruct((padded_b, self.n_out), jnp.float32),
            grid_spec=pltpu.PrefetchScalarGridSpec(
                num_scalar_prefetch=0,
                grid=(padded_b // tile,),
                in_specs=in_specs,
                out_specs=out_spec,
            ),
            compiler_params=pltpu.CompilerParams(
                dimension_semantics=("parallel",),
                vmem_limit_bytes=vmem_limit,
            ),
            cost_estimate=cost,
        )
        self._call_cache[key] = call
        return call

    def __call__(self, obs):
        B, ob_dim = obs.shape
        assert ob_dim == self.ob_dim, (ob_dim, self.ob_dim)
        tile, padded_b = _choose_batch_tile(B, self.batch_tile)
        # Only the observation is padded per call (batch -> tile multiple).
        obs_p = jnp.zeros((padded_b, ob_dim), self.matmul_dtype)
        obs_p = obs_p.at[:B].set(obs.astype(self.matmul_dtype))
        out_p = self._build_call(tile, padded_b)(obs_p, *self.flat_params)
        # Strip batch + output-lane padding outside the kernel.
        return out_p[:B, :self.ac_dim]


def init_mlp_params(key, ob_dim, ac_dim, n_layers, size):
    """Deterministic synthetic parameters (shapes per MLPPolicy.__init__)."""
    dims = [ob_dim] + [size] * n_layers + [ac_dim]
    params = []
    for li in range(len(dims) - 1):
        key, kw, kb = jax.random.split(key, 3)
        fan_in, fan_out = dims[li], dims[li + 1]
        bound = 1.0 / jnp.sqrt(fan_in)
        w = jax.random.uniform(kw, (fan_in, fan_out), jnp.float32, -bound, bound)
        b = jax.random.uniform(kb, (1, fan_out), jnp.float32, -bound, bound)
        params.append((w, b))
    return params


def mlp_forward_ref(obs, params, n_layers):
    """Pure-JAX reference (full f32 matmul precision)."""
    h = obs
    for li in range(n_layers):
        w, b = params[li]
        h = jnp.tanh(jnp.dot(h, w, precision=jax.lax.Precision.HIGHEST) + b)
    w, b = params[-1]
    return jnp.dot(h, w, precision=jax.lax.Precision.HIGHEST) + b


if __name__ == "__main__":
    # Shapes consistent with MLPPolicy(ac_dim=4, ob_dim=16, n_layers=2, size=32)
    B, ob_dim, ac_dim, n_layers, size = 64, 16, 4, 2, 32

    key = jax.random.PRNGKey(0)
    key, k_obs = jax.random.split(key)
    obs = jax.random.normal(k_obs, (B, ob_dim), jnp.float32)
    params = init_mlp_params(key, ob_dim, ac_dim, n_layers, size)

    # logstd in the continuous branch is a parameter, not used by forward().
    logstd = jnp.zeros((ac_dim,), jnp.float32)  # noqa: F841

    ref = mlp_forward_ref(obs, params, n_layers)

    # f32 MXU path: faithful to the PyTorch forward, tight tolerance.
    policy_f32 = PallasMLPPolicy(params, matmul_dtype=jnp.float32)
    out_f32 = jax.block_until_ready(policy_f32(obs))
    assert out_f32.shape == (B, ac_dim)
    assert jnp.allclose(out_f32, ref, atol=1e-4, rtol=1e-4), "f32 mismatch"

    # bf16 MXU + bf16 tanh path (default; fast on v6e/v7x): looser tolerance.
    policy_bf16 = PallasMLPPolicy(params)
    out_bf16 = jax.block_until_ready(policy_bf16(obs))
    assert out_bf16.shape == (B, ac_dim)
    assert jnp.allclose(out_bf16, ref, atol=2e-2, rtol=2e-2), "bf16 mismatch"

    print("KERNEL_OK")
</pallas_src>

<mosaic_0001>
module attributes {stable_mosaic.version = 11 : i64} {
  func.func @_mlp_kernel(%arg0: i32, %arg1: memref<64x16xf32, #tpu.memory_space<vmem>>, %arg2: memref<16x128xf32, #tpu.memory_space<vmem>>, %arg3: memref<1x128xf32, #tpu.memory_space<vmem>>, %arg4: memref<128x128xf32, #tpu.memory_space<vmem>>, %arg5: memref<1x128xf32, #tpu.memory_space<vmem>>, %arg6: memref<128x128xf32, #tpu.memory_space<vmem>>, %arg7: memref<1x128xf32, #tpu.memory_space<vmem>>, %arg8: memref<64x128xf32, #tpu.memory_space<vmem>>) attributes {dimension_semantics = [#tpu.dimension_semantics<parallel>], iteration_bounds = array<i64: 1>, scalar_prefetch = 0 : i64, scratch_operands = 0 : i64, tpu.core_type = #tpu.core_type<tc>, window_params = [{transform_indices = @transform_0, window_bounds = array<i64: 64, 16>}, {pipeline_mode = #tpu.pipeline_mode<synchronous>, transform_indices = @transform_1, window_bounds = array<i64: 16, 128>}, {pipeline_mode = #tpu.pipeline_mode<synchronous>, transform_indices = @transform_2, window_bounds = array<i64: 1, 128>}, {pipeline_mode = #tpu.pipeline_mode<synchronous>, transform_indices = @transform_3, window_bounds = array<i64: 128, 128>}, {pipeline_mode = #tpu.pipeline_mode<synchronous>, transform_indices = @transform_4, window_bounds = array<i64: 1, 128>}, {pipeline_mode = #tpu.pipeline_mode<synchronous>, transform_indices = @transform_5, window_bounds = array<i64: 128, 128>}, {pipeline_mode = #tpu.pipeline_mode<synchronous>, transform_indices = @transform_6, window_bounds = array<i64: 1, 128>}, {transform_indices = @transform_7, window_bounds = array<i64: 64, 128>}]} {
    %c0 = arith.constant 0 : index
    %c0_0 = arith.constant 0 : index
    %0 = vector.load %arg1[%c0, %c0_0] : memref<64x16xf32, #tpu.memory_space<vmem>>, vector<64x16xf32>
    %c0_1 = arith.constant 0 : index
    %c0_2 = arith.constant 0 : index
    %1 = vector.load %arg2[%c0_1, %c0_2] : memref<16x128xf32, #tpu.memory_space<vmem>>, vector<16x128xf32>
    %c0_3 = arith.constant 0 : index
    %c0_4 = arith.constant 0 : index
    %2 = vector.load %arg3[%c0_3, %c0_4] : memref<1x128xf32, #tpu.memory_space<vmem>>, vector<1x128xf32>
    %cst = arith.constant dense<0.000000e+00> : vector<64x128xf32>
    %3 = tpu.matmul %0, %1, %cst {dimension_numbers = #tpu.dot_dimension_numbers<[1], [0], [0], [1], [0, 0, 1, 1], [], []>} : vector<64x16xf32>, vector<16x128xf32>, vector<64x128xf32> -> vector<64x128xf32>
    %4 = vector.broadcast %2 : vector<1x128xf32> to vector<64x128xf32>
    %5 = arith.addf %3, %4 : vector<64x128xf32>
    %6 = math.tanh %5 : vector<64x128xf32>
    %c0_5 = arith.constant 0 : index
    %c0_6 = arith.constant 0 : index
    %7 = vector.load %arg4[%c0_5, %c0_6] : memref<128x128xf32, #tpu.memory_space<vmem>>, vector<128x128xf32>
    %c0_7 = arith.constant 0 : index
    %c0_8 = arith.constant 0 : index
    %8 = vector.load %arg5[%c0_7, %c0_8] : memref<1x128xf32, #tpu.memory_space<vmem>>, vector<1x128xf32>
    %cst_9 = arith.constant dense<0.000000e+00> : vector<64x128xf32>
    %9 = tpu.matmul %6, %7, %cst_9 {dimension_numbers = #tpu.dot_dimension_numbers<[1], [0], [0], [1], [0, 0, 1, 1], [], []>} : vector<64x128xf32>, vector<128x128xf32>, vector<64x128xf32> -> vector<64x128xf32>
    %10 = vector.broadcast %8 : vector<1x128xf32> to vector<64x128xf32>
    %11 = arith.addf %9, %10 : vector<64x128xf32>
    %12 = math.tanh %11 : vector<64x128xf32>
    %c0_10 = arith.constant 0 : index
    %c0_11 = arith.constant 0 : index
    %13 = vector.load %arg6[%c0_10, %c0_11] : memref<128x128xf32, #tpu.memory_space<vmem>>, vector<128x128xf32>
    %c0_12 = arith.constant 0 : index
    %c0_13 = arith.constant 0 : index
    %14 = vector.load %arg7[%c0_12, %c0_13] : memref<1x128xf32, #tpu.memory_space<vmem>>, vector<1x128xf32>
    %cst_14 = arith.constant dense<0.000000e+00> : vector<64x128xf32>
    %15 = tpu.matmul %12, %13, %cst_14 {dimension_numbers = #tpu.dot_dimension_numbers<[1], [0], [0], [1], [0, 0, 1, 1], [], []>} : vector<64x128xf32>, vector<128x128xf32>, vector<64x128xf32> -> vector<64x128xf32>
    %16 = vector.broadcast %14 : vector<1x128xf32> to vector<64x128xf32>
    %17 = arith.addf %15, %16 : vector<64x128xf32>
    %c0_15 = arith.constant 0 : index
    %c0_16 = arith.constant 0 : index
    %18 = vector.load %arg8[%c0_15, %c0_16] : memref<64x128xf32, #tpu.memory_space<vmem>>, vector<64x128xf32>
    tpu.vector_store %arg8[%c0_15, %c0_16], %17 {strides = array<i32>} : memref<64x128xf32, #tpu.memory_space<vmem>>, vector<64x128xf32>,
    return
  }
  func.func @transform_0(%arg0: i32) -> (i32, i32) {
    %c0_i32 = arith.constant 0 : i32
    %c0_i32_0 = arith.constant 0 : i32
    return %arg0, %c0_i32 : i32, i32
  }
  func.func @transform_1(%arg0: i32) -> (i32, i32) {
    %c0_i32 = arith.constant 0 : i32
    %c0_i32_0 = arith.constant 0 : i32
    %c0_i32_1 = arith.constant 0 : i32
    return %c0_i32, %c0_i32_0 : i32, i32
  }
  func.func @transform_2(%arg0: i32) -> (i32, i32) {
    %c0_i32 = arith.constant 0 : i32
    %c0_i32_0 = arith.constant 0 : i32
    %c0_i32_1 = arith.constant 0 : i32
    return %c0_i32, %c0_i32_0 : i32, i32
  }
  func.func @transform_3(%arg0: i32) -> (i32, i32) {
    %c0_i32 = arith.constant 0 : i32
    %c0_i32_0 = arith.constant 0 : i32
    %c0_i32_1 = arith.constant 0 : i32
    return %c0_i32, %c0_i32_0 : i32, i32
  }
  func.func @transform_4(%arg0: i32) -> (i32, i32) {
    %c0_i32 = arith.constant 0 : i32
    %c0_i32_0 = arith.constant 0 : i32
    %c0_i32_1 = arith.constant 0 : i32
    return %c0_i32, %c0_i32_0 : i32, i32
  }
  func.func @transform_5(%arg0: i32) -> (i32, i32) {
    %c0_i32 = arith.constant 0 : i32
    %c0_i32_0 = arith.constant 0 : i32
    %c0_i32_1 = arith.constant 0 : i32
    return %c0_i32, %c0_i32_0 : i32, i32
  }
  func.func @transform_6(%arg0: i32) -> (i32, i32) {
    %c0_i32 = arith.constant 0 : i32
    %c0_i32_0 = arith.constant 0 : i32
    %c0_i32_1 = arith.constant 0 : i32
    return %c0_i32, %c0_i32_0 : i32, i32
  }
  func.func @transform_7(%arg0: i32) -> (i32, i32) {
    %c0_i32 = arith.constant 0 : i32
    %c0_i32_0 = arith.constant 0 : i32
    return %arg0, %c0_i32 : i32, i32
  }
}

</mosaic_0001>

<bundles_post_ra>
// kernel: tpu_custom_call.1
= control target key start
LH: loop header
LB: loop body
LE: loop exit
PB: predicated region body
PF: predicated region fallthrough
CT: control target
= control target key end

     0   :  { %12 = vsyncpa [#allocation3], 0  ;;  %s987_s0 = inlined_call_operand.vmem [shape: f32[64,16], index: 0, kind: input, shape index: {}]   ;;  %s988_s1 = inlined_call_operand.vmem [shape: f32[16,128], index: 1, kind: input, shape index: {}]   ;;  %s989_s2 = inlined_call_operand.vmem [shape: f32[1,128], index: 2, kind: input, shape index: {}]   ;;  %s990_s3 = inlined_call_operand.hbm [shape: f32[128,128], index: 3, kind: input, shape index: {}]   ;;  %s991_s4 = inlined_call_operand.vmem [shape: f32[1,128], index: 4, kind: input, shape index: {}]   ;;  %s992_s5 = inlined_call_operand.hbm [shape: f32[128,128], index: 5, kind: input, shape index: {}]   ;;  %s993_s6 = inlined_call_operand.vmem [shape: f32[1,128], index: 6, kind: input, shape index: {}]   ;;  %s994_s7 = inlined_call_operand.hbm [shape: f32[64,128], index: 7, kind: output, shape index: {}]  }
   0x1   :  { %13 = vsyncpa [#allocation6], 0 }
   0x2   :  { %14 = vsyncpa [#allocation4], 0  ;;  %s850_s24 = smov [#allocation2]   ;;  %s778_s28 = scalar_lea.hbm %s990_s3, 2048 }
   0x3   :  { %s26_s25 = sshll.u32 %s850_s24, 4  ;;  %p779_p0 = scmp.ne.s32.totalorder %s990_s3, %s778_s28  ;;  %s27_s25 = int_to_ptr.vmem [resolvable:$true] %s26_s25 }
   0x4   :  { %p782_p1 = scmp.lt.u32.totalorder %s778_s28, %s990_s3 }
   0x6   :  { %p784_p2 = pnand %p782_p1, %p779_p0 }
   0x8   :  { %787 = shalt.err (!%p784_p2)
}
   0x9   :  { %s788_s10 = scalar_lea.vmem %s27_s25, 2048  ;;  %p793_p4 = scmp.lt.s32.totalorder %s27_s25, %s27_s25 }
   0xa   :  { %p789_p3 = scmp.ne.s32.totalorder %s27_s25, %s788_s10  ;;  %p794_p5 = scmp.lt.s32.totalorder %s788_s10, %s788_s10 }
   0xc   :  { %p795_p6 = por %p794_p5, %p793_p4 }
   0xe   :  { %p796_p7 = pnand %p795_p6, %p789_p3 }
  0x10   :  { %799 = shalt.err (!%p796_p7)
}
  0x11   :  { %s851_s11 = smov 128   ;;  %s852_s12 = smov 8  }
  0x12   :  { %32 = dma.hbm_to_vmem [thread:$0]  %s990_s3, 2048, %s27_s25, [#allocation3], %s851_s11, %s851_s11, %s852_s12  }
  0x13   :  { %s853_s15 = smov [#allocation5]   ;;  %s800_s19 = scalar_lea.hbm %s992_s5, 2048 }
  0x14   :  { %s40_s16 = sshll.u32 %s853_s15, 4  ;;  %p801_p8 = scmp.ne.s32.totalorder %s992_s5, %s800_s19  ;;  %s41_s16 = int_to_ptr.vmem [resolvable:$true] %s40_s16 }
  0x15   :  { %p804_p9 = scmp.lt.u32.totalorder %s800_s19, %s992_s5 }
  0x17   :  { %p806_p10 = pnand %p804_p9, %p801_p8 }
  0x19   :  { %809 = shalt.err (!%p806_p10)
}
  0x1a   :  { %s810_s24 = scalar_lea.vmem %s41_s16, 2048  ;;  %p815_p12 = scmp.lt.s32.totalorder %s41_s16, %s41_s16 }
  0x1b   :  { %p811_p11 = scmp.ne.s32.totalorder %s41_s16, %s810_s24  ;;  %p816_p13 = scmp.lt.s32.totalorder %s810_s24, %s810_s24 }
  0x1d   :  { %p817_p0 = por %p816_p13, %p815_p12 }
  0x1f   :  { %p818_p1 = pnand %p817_p0, %p811_p11 }
  0x21   :  { %821 = shalt.err (!%p818_p1)
}
  0x22   :  { %46 = dma.hbm_to_vmem [thread:$0]  %s992_s5, 2048, %s41_s16, [#allocation6], %s851_s11, %s851_s11, %s852_s12  }
  0x23   :  { %844 = dma.done.wait [#allocation3], 2048  }
  0x24   :  { %845 = vsyncadd [#allocation3], 4294965248 }
  0x25   :  { %846 = dma.done.wait [#allocation6], 2048  }
  0x26   :  { %847 = vsyncadd [#allocation6], 4294965248  ;;  %vm72_vm0 = vcmask 130048   ;;  %v63_v0 = vld [vmem:[%s988_s1] sm:$0xff]  ;;  %v64_v1 = vld [vmem:[%s988_s1 + $0x8] sm:$0xff]  ;;  %s854_s25 = smov [#allocation7]  }
  0x27   :  { %v55_v2 = vld [vmem:[%s987_s0] sm:$0xff]  ;;  %v673_v3 = vpack.c.bf16 %v64_v1, %v63_v0  ;;  %v211_v5 = vld [vmem:[#allocation2 + $0x8] sm:$0xff]  ;;  %v212_v8 = vld [vmem:[#allocation2 + $0x10] sm:$0xff]  ;;  %s487_s26 = sshll.u32 %s854_s25, 4  ;;  %s488_s26 = int_to_ptr.vmem [resolvable:$true] %s487_s26 }
  0x28   :  { %573 = vmatprep.mubr.msk.f32.mxu0 %vm72_vm0, %v55_v2  ;;  %v210_v4 = vld [vmem:[#allocation2] sm:$0xff]  ;;  %v56_v6 = vld [vmem:[%s987_s0 + $0x8] sm:$0xff]  ;;  %v213_v9 = vld [vmem:[#allocation2 + $0x18] sm:$0xff]  ;;  %p827_p3 = scmp.lt.s32.totalorder %s488_s26, %s488_s26 }
  0x29   :  { %674 = vmatprep.subr.bf16.mxu0 %v673_v3  ;;  %v677_v7 = vpack.c.bf16 %v211_v5, %v210_v4  ;;  %v57_v10 = vld [vmem:[%s987_s0 + $0x10] sm:$0xff]  ;;  %v681_v11 = vpack.c.bf16 %v213_v9, %v212_v8  ;;  %v214_v12 = vld [vmem:[#allocation2 + $0x20] sm:$0xff]  ;;  %v215_v13 = vld [vmem:[#allocation2 + $0x28] sm:$0xff] }
  0x2a   :  { %676 = vmatpush3.bf16.msra.mxu0 %v673_v3  ;;  %v58_v14 = vld [vmem:[%s987_s0 + $0x18] sm:$0xff]  ;;  %v685_v15 = vpack.c.bf16 %v215_v13, %v214_v12  ;;  %v59_v16 = vld [vmem:[%s987_s0 + $0x20] sm:$0xff]  ;;  %v216_v17 = vld [vmem:[#allocation2 + $0x30] sm:$0xff] }
  0x2b   :  { %678 = vmatprep.subr.bf16.mxu1 %v677_v7  ;;  %v217_v18 = vld [vmem:[#allocation2 + $0x38] sm:$0xff]  ;;  %v60_v19 = vld [vmem:[%s987_s0 + $0x28] sm:$0xff]  ;;  %v61_v21 = vld [vmem:[%s987_s0 + $0x30] sm:$0xff] }
  0x2c   :  { %680 = vmatpush3.bf16.msra.mxu1 %v677_v7  ;;  %v689_v20 = vpack.c.bf16 %v217_v18, %v216_v17  ;;  %v62_v22 = vld [vmem:[%s987_s0 + $0x38] sm:$0xff]  ;;  %v218_v23 = vld [vmem:[#allocation2 + $0x40] sm:$0xff]  ;;  %v219_v24 = vld [vmem:[#allocation2 + $0x48] sm:$0xff] }
  0x2d   :  { %574 = vmatmul.mubr.msk.f32.vlgmr.msra.gmra.mrb[0].mxu0 %vm72_vm0, %v56_v6  ;;  %682 = vmatprep.subr.bf16.mxu1 %v681_v11  ;;  %v693_v25 = vpack.c.bf16 %v219_v24, %v218_v23  ;;  %v220_v26 = vld [vmem:[#allocation2 + $0x50] sm:$0xff]  ;;  %v221_v27 = vld [vmem:[#allocation2 + $0x58] sm:$0xff]  ;;  %v222_v29 = vld [vmem:[#allocation2 + $0x60] sm:$0xff] }
  0x2e   :  { %576 = vmatprep.mubr.msk.f32.mxu0 %vm72_vm0, %v57_v10  ;;  %v697_v28 = vpack.c.bf16 %v221_v27, %v220_v26  ;;  %v223_v30 = vld [vmem:[#allocation2 + $0x68] sm:$0xff]  ;;  %v224_v32 = vld [vmem:[#allocation2 + $0x70] sm:$0xff]  ;;  %v225_v33 = vld [vmem:[#allocation2 + $0x78] sm:$0xff] }
  0x2f   :  { %v701_v31 = vpack.c.bf16 %v223_v30, %v222_v29  ;;  %v705_v34 = vpack.c.bf16 %v225_v33, %v224_v32  ;;  %v346_v35 = vld [vmem:[#allocation5] sm:$0xff]  ;;  %v347_v36 = vld [vmem:[#allocation5 + $0x8] sm:$0xff]  ;;  %v348_v37 = vld [vmem:[#allocation5 + $0x10] sm:$0xff] }
  0x30   :  { %684 = vmatpush3.bf16.msra.mxu1 %v681_v11  ;;  %v709_v38 = vpack.c.bf16 %v347_v36, %v346_v35  ;;  %v349_v39 = vld [vmem:[#allocation5 + $0x18] sm:$0xff]  ;;  %v350_v41 = vld [vmem:[#allocation5 + $0x20] sm:$0xff]  ;;  %v351_v42 = vld [vmem:[#allocation5 + $0x28] sm:$0xff] }
  0x31   :  { %577 = vmatmul.mubr.msk.f32.gmra.mrb[2].mxu0 %vm72_vm0, %v58_v14  ;;  %686 = vmatprep.subr.bf16.mxu1 %v685_v15  ;;  %v713_v40 = vpack.c.bf16 %v349_v39, %v348_v37  ;;  %v717_v43 = vpack.c.bf16 %v351_v42, %v350_v41  ;;  %v352_v44 = vld [vmem:[#allocation5 + $0x30] sm:$0xff]  ;;  %v353_v45 = vld [vmem:[#allocation5 + $0x38] sm:$0xff]  ;;  %v500_v47 = vld [vmem:[%s989_s2] ss:$0 sm:$0xff] }
  0x32   :  { %579 = vmatprep.mubr.msk.f32.mxu0 %vm72_vm0, %v59_v16  ;;  %710 = vmatprep.subr.bf16.mxu0 %v709_v38  ;;  %v721_v46 = vpack.c.bf16 %v353_v45, %v352_v44  ;;  %v354_v8 = vld [vmem:[#allocation5 + $0x40] sm:$0xff]  ;;  %v355_v9 = vld [vmem:[#allocation5 + $0x48] sm:$0xff]  ;;  %v356_v11 = vld [vmem:[#allocation5 + $0x50] sm:$0xff] }
  0x33   :  { %712 = vmatpush3.bf16.msra.mxu0 %v709_v38  ;;  %v725_v10 = vpack.c.bf16 %v355_v9, %v354_v8  ;;  %v357_v12 = vld [vmem:[#allocation5 + $0x58] sm:$0xff]  ;;  %v358_v14 = vld [vmem:[#allocation5 + $0x60] sm:$0xff]  ;;  %v360_v17 = vld [vmem:[#allocation5 + $0x70] sm:$0xff] }
  0x34   :  { %688 = vmatpush3.bf16.msra.mxu1 %v685_v15  ;;  %714 = vmatprep.subr.bf16.mxu0 %v713_v40  ;;  %v729_v13 = vpack.c.bf16 %v357_v12, %v356_v11  ;;  %v359_v15 = vld [vmem:[#allocation5 + $0x68] sm:$0xff]  ;;  %v361_v18 = vld [vmem:[#allocation5 + $0x78] sm:$0xff]  ;;  %v510_v45 = vld [vmem:[%s993_s6] ss:$0 sm:$0xff]  ;;  %s822_s6 = scalar_lea.vmem %s488_s26, 1024 }
  0x35   :  { %580 = vmatmul.mubr.msk.f32.gmra.mrb[4].mxu0 %vm72_vm0, %v60_v19  ;;  %690 = vmatprep.subr.bf16.mxu1 %v689_v20  ;;  %v733_v16 = vpack.c.bf16 %v359_v15, %v358_v14  ;;  %v737_v19 = vpack.c.bf16 %v361_v18, %v360_v17  ;;  %p823_p2 = scmp.ne.s32.totalorder %s488_s26, %s822_s6  ;;  %p828_p4 = scmp.lt.s32.totalorder %s822_s6, %s822_s6 }
  0x36   :  { %582 = vmatprep.mubr.msk.f32.mxu0 %vm72_vm0, %v61_v21 }
  0x37   :  { %716 = vmatpush3.bf16.msra.mxu0 %v713_v40  ;;  %p829_p5 = por %p828_p4, %p827_p3 }
  0x38   :  { %692 = vmatpush3.bf16.msra.mxu1 %v689_v20  ;;  %718 = vmatprep.subr.bf16.mxu0 %v717_v43  ;;  %v509_v20 = vld [vmem:[%s991_s4] ss:$0 sm:$0xff] }
  0x39   :  { %583 = vmatmul.mubr.msk.f32.gmra.mrb[6].mxu0 %vm72_vm0, %v62_v22  ;;  %694 = vmatprep.subr.bf16.mxu1 %v693_v25  ;;  %p830_p6 = pnand %p829_p5, %p823_p2 }
  0x3b   :  { %720 = vmatpush3.bf16.msra.mxu0 %v717_v43 }
  0x3c   :  { %696 = vmatpush3.bf16.msra.mxu1 %v693_v25  ;;  %722 = vmatprep.subr.bf16.mxu0 %v721_v46 }
  0x3d   :  { %698 = vmatprep.subr.bf16.mxu1 %v697_v28 }
  0x3f   :  { %724 = vmatpush3.bf16.msra.mxu0 %v721_v46 }
  0x40   :  { %700 = vmatpush3.bf16.msra.mxu1 %v697_v28  ;;  %726 = vmatprep.subr.bf16.mxu0 %v725_v10 }
  0x41   :  { %702 = vmatprep.subr.bf16.mxu1 %v701_v31 }
  0x43   :  { %728 = vmatpush3.bf16.msra.mxu0 %v725_v10 }
  0x44   :  { %704 = vmatpush3.bf16.msra.mxu1 %v701_v31  ;;  %730 = vmatprep.subr.bf16.mxu0 %v729_v13 }
  0x45   :  { %706 = vmatprep.subr.bf16.mxu1 %v705_v34 }
  0x47   :  { %732 = vmatpush3.bf16.msra.mxu0 %v729_v13 }
  0x48   :  { %708 = vmatpush3.bf16.msra.mxu1 %v705_v34  ;;  %734 = vmatprep.subr.bf16.mxu0 %v733_v16 }
  0x4b   :  { %736 = vmatpush3.bf16.msra.mxu0 %v733_v16 }
  0x4c   :  { %738 = vmatprep.subr.bf16.mxu0 %v737_v19 }
  0x4f   :  { %740 = vmatpush3.bf16.msra.mxu0 %v737_v19 }
 0x100   :  { %v575_v48 = vpop.f32.mrb[0].mxu0 }
 0x101   :  { %v169_v49 = vadd.f32 %v575_v48, %v500_v47  ;;  %v163_v50 = vpop.f32.mrb[1].mxu0 }
 0x102   :  { %v164_v51 = vadd.f32 %v500_v47, %v163_v50 }
 0x104   :  { %746 = vtanh.f32 %v164_v51  ;;  %v578_v52 = vpop.f32.mrb[2].mxu0 }
 0x105   :  { %748 = vtanh.f32 %v169_v49  ;;  %v179_v53 = vadd.f32 %v578_v52, %v500_v47  ;;  %v173_v54 = vpop.f32.mrb[3].mxu0 }
 0x106   :  { %v174_v55 = vadd.f32 %v500_v47, %v173_v54 }
 0x108   :  { %750 = vtanh.f32 %v174_v55  ;;  %v581_v56 = vpop.f32.mrb[4].mxu0 }
 0x109   :  { %752 = vtanh.f32 %v179_v53  ;;  %v189_v57 = vadd.f32 %v581_v56, %v500_v47  ;;  %v183_v58 = vpop.f32.mrb[5].mxu0 }
 0x10a   :  { %v184_v59 = vadd.f32 %v500_v47, %v183_v58 }
 0x10c   :  { %754 = vtanh.f32 %v184_v59  ;;  %v584_v60 = vpop.f32.mrb[6].mxu0 }
 0x10d   :  { %756 = vtanh.f32 %v189_v57  ;;  %v199_v61 = vadd.f32 %v584_v60, %v500_v47  ;;  %v193_v62 = vpop.f32.mrb[7].mxu0 }
 0x10e   :  { %v747_v63 = vpop.eup %746  ;;  %v194_v0 = vadd.f32 %v500_v47, %v193_v62 }
 0x10f   :  { %v749_v1 = vpop.eup %748  ;;  %617 = vmatprep.mubr.f32.mxu1 %v747_v63 }
 0x110   :  { %758 = vtanh.f32 %v194_v0  ;;  %618 = vmatmul.mubr.f32.vlgmr.msra.gmra.mrb[0].mxu1 %v749_v1 }
 0x111   :  { %760 = vtanh.f32 %v199_v61 }
 0x112   :  { %v751_v2 = vpop.eup %750 }
 0x113   :  { %v753_v3 = vpop.eup %752  ;;  %620 = vmatprep.mubr.f32.mxu1 %v751_v2 }
 0x114   :  { %621 = vmatmul.mubr.f32.gmra.mrb[2].mxu1 %v753_v3 }
 0x116   :  { %v755_v4 = vpop.eup %754 }
 0x117   :  { %v757_v5 = vpop.eup %756  ;;  %623 = vmatprep.mubr.f32.mxu1 %v755_v4 }
 0x118   :  { %624 = vmatmul.mubr.f32.gmra.mrb[4].mxu1 %v757_v5 }
 0x11a   :  { %v759_v6 = vpop.eup %758 }
 0x11b   :  { %v761_v7 = vpop.eup %760  ;;  %626 = vmatprep.mubr.f32.mxu1 %v759_v6 }
 0x11c   :  { %627 = vmatmul.mubr.f32.gmra.mrb[6].mxu1 %v761_v7 }
 0x1e3   :  { %v619_v21 = vpop.f32.mrb[0].mxu1 }
 0x1e4   :  { %v305_v22 = vadd.f32 %v619_v21, %v509_v20  ;;  %v299_v23 = vpop.f32.mrb[1].mxu1 }
 0x1e5   :  { %v300_v24 = vadd.f32 %v509_v20, %v299_v23 }
 0x1e7   :  { %762 = vtanh.f32 %v300_v24  ;;  %v622_v25 = vpop.f32.mrb[2].mxu1 }
 0x1e8   :  { %764 = vtanh.f32 %v305_v22  ;;  %v315_v26 = vadd.f32 %v622_v25, %v509_v20  ;;  %v309_v27 = vpop.f32.mrb[3].mxu1 }
 0x1e9   :  { %v310_v28 = vadd.f32 %v509_v20, %v309_v27 }
 0x1eb   :  { %766 = vtanh.f32 %v310_v28  ;;  %v625_v29 = vpop.f32.mrb[4].mxu1 }
 0x1ec   :  { %768 = vtanh.f32 %v315_v26  ;;  %v325_v30 = vadd.f32 %v625_v29, %v509_v20  ;;  %v319_v31 = vpop.f32.mrb[5].mxu1 }
 0x1ed   :  { %v320_v32 = vadd.f32 %v509_v20, %v319_v31 }
 0x1ef   :  { %770 = vtanh.f32 %v320_v32  ;;  %v628_v33 = vpop.f32.mrb[6].mxu1 }
 0x1f0   :  { %772 = vtanh.f32 %v325_v30  ;;  %v335_v34 = vadd.f32 %v628_v33, %v509_v20  ;;  %v329_v35 = vpop.f32.mrb[7].mxu1 }
 0x1f1   :  { %v763_v36 = vpop.eup %762  ;;  %v330_v37 = vadd.f32 %v509_v20, %v329_v35 }
 0x1f2   :  { %v765_v38 = vpop.eup %764  ;;  %661 = vmatprep.mubr.f32.mxu0 %v763_v36 }
 0x1f3   :  { %774 = vtanh.f32 %v330_v37  ;;  %662 = vmatmul.mubr.f32.vlgmr.msra.gmra.mrb[8].mxu0 %v765_v38 }
 0x1f4   :  { %776 = vtanh.f32 %v335_v34 }
 0x1f5   :  { %v767_v39 = vpop.eup %766 }
 0x1f6   :  { %v769_v40 = vpop.eup %768  ;;  %664 = vmatprep.mubr.f32.mxu0 %v767_v39 }
 0x1f7   :  { %665 = vmatmul.mubr.f32.gmra.mrb[10].mxu0 %v769_v40 }
 0x1f9   :  { %v771_v41 = vpop.eup %770 }
 0x1fa   :  { %v773_v42 = vpop.eup %772  ;;  %667 = vmatprep.mubr.f32.mxu0 %v771_v41 }
 0x1fb   :  { %668 = vmatmul.mubr.f32.gmra.mrb[12].mxu0 %v773_v42 }
 0x1fd   :  { %v775_v43 = vpop.eup %774 }
 0x1fe   :  { %v777_v44 = vpop.eup %776  ;;  %670 = vmatprep.mubr.f32.mxu0 %v775_v43 }
 0x1ff   :  { %671 = vmatmul.mubr.f32.gmra.mrb[14].mxu0 %v777_v44 }
 0x2c6   :  { %v663_v46 = vpop.f32.mrb[8].mxu0 }
 0x2c7   :  { %v441_v47 = vadd.f32 %v663_v46, %v510_v45  ;;  %v435_v48 = vpop.f32.mrb[9].mxu0 }
 0x2c8   :  { %v436_v49 = vadd.f32 %v510_v45, %v435_v48 }
 0x2c9   :  { %475 = vst [vmem:[#allocation7 + $0x8] sm:$0xff] %v441_v47 }
 0x2ca   :  { %474 = vst [vmem:[#allocation7] sm:$0xff] %v436_v49  ;;  %v666_v50 = vpop.f32.mrb[10].mxu0 }
 0x2cb   :  { %v451_v51 = vadd.f32 %v666_v50, %v510_v45  ;;  %v445_v52 = vpop.f32.mrb[11].mxu0 }
 0x2cc   :  { %v446_v53 = vadd.f32 %v510_v45, %v445_v52 }
 0x2cd   :  { %477 = vst [vmem:[#allocation7 + $0x18] sm:$0xff] %v451_v51 }
 0x2ce   :  { %476 = vst [vmem:[#allocation7 + $0x10] sm:$0xff] %v446_v53  ;;  %v669_v54 = vpop.f32.mrb[12].mxu0 }
 0x2cf   :  { %v461_v55 = vadd.f32 %v669_v54, %v510_v45  ;;  %v455_v56 = vpop.f32.mrb[13].mxu0 }
 0x2d0   :  { %v456_v57 = vadd.f32 %v510_v45, %v455_v56 }
 0x2d1   :  { %479 = vst [vmem:[#allocation7 + $0x28] sm:$0xff] %v461_v55 }
 0x2d2   :  { %478 = vst [vmem:[#allocation7 + $0x20] sm:$0xff] %v456_v57  ;;  %v672_v58 = vpop.f32.mrb[14].mxu0 }
 0x2d3   :  { %v471_v59 = vadd.f32 %v672_v58, %v510_v45  ;;  %v465_v60 = vpop.f32.mrb[15].mxu0 }
 0x2d4   :  { %v466_v61 = vadd.f32 %v510_v45, %v465_v60 }
 0x2d5   :  { %481 = vst [vmem:[#allocation7 + $0x38] sm:$0xff] %v471_v59 }
 0x2d6   :  { %480 = vst [vmem:[#allocation7 + $0x30] sm:$0xff] %v466_v61 }
 0x2d7   :  { %833 = shalt.err (!%p830_p6)
}
 0x2d8   :  { %s834_s29 = scalar_lea.hbm %s994_s7, 1024 }
 0x2d9   :  { %p835_p7 = scmp.ne.s32.totalorder %s994_s7, %s834_s29  ;;  %p838_p8 = scmp.lt.u32.totalorder %s834_s29, %s994_s7 }
 0x2db   :  { %p840_p9 = pnand %p838_p8, %p835_p7 }
 0x2dd   :  { %843 = shalt.err (!%p840_p9)
}
 0x2de   :  { %493 = dma.vmem_to_hbm [thread:$0]  %s488_s26, 1024, %s994_s7, [#allocation4], %s851_s11, %s851_s11, %s852_s12  }
 0x2df   :  { %848 = dma.done.wait [#allocation4], 1024  }
 0x2e0   :  { %849 = vsyncadd [#allocation4], 4294966272 }
 0x2e1   :  { %497 = vsyncpa [#allocation3], 1 }
 0x2e2   :  { %498 = vsyncpa [#allocation6], 1 }
 0x2e3   :  { %499 = vsyncpa [#allocation4], 1 }

</bundles_post_ra>
